<compile_context>
chip_gen: v7x
topology: tpu7x:2x2x1
jax: 0.10.0
libtpu: 0.0.40
codegen_flags: <defaults>
</compile_context>

<pallas_src>
import functools

import jax
import jax.numpy as jnp
from jax.experimental import pallas as pl
from jax.experimental.pallas import tpu as pltpu


def _resblock_kernel(x_ref, w0_ref, b0_ref, wb_ref, bb_ref, mask_ref, y_ref,
                     *, H, W, C_out, num_conv):
    """One batch element.  x_ref: (1, C_in, N); y_ref: (1, C_out, N)."""
    N = H * W
    taps = [(dy, dx) for dy in (-1, 0, 1) for dx in (-1, 0, 1)]

    def conv3x3(x_cn, w_stacked, bias_c1):
        # x_cn: (C, N) f32, w_stacked: (9*C_out, C), bias_c1: (C_out, 1)
        # Single MXU matmul covering all 9 taps at once.
        y_all = jnp.dot(w_stacked, x_cn,
                        preferred_element_type=jnp.float32)      # (9*C_out, N)
        acc = None
        for t, (dy, dx) in enumerate(taps):
            off = dy * W + dx                                    # flat spatial offset
            y_t = y_all[t * C_out:(t + 1) * C_out, :]            # (C_out, N)
            if off != 0:
                # want shifted[n] = y_t[n + off]  ->  roll by -off (XLU lane roll)
                y_t = pltpu.roll(y_t, shift=(-off) % N, axis=1)
            # zero out taps that fall outside the padded image border
            contrib = y_t * mask_ref[t]                          # (1, N) mask bcast
            acc = contrib if acc is None else acc + contrib
        return acc + bias_c1                                     # (C_out, N)

    x = x_ref[0]                                                 # (C_in, N)

    # feat = conv(inp)
    feat = conv3x3(x, w0_ref[...], b0_ref[...])

    # h = block(feat) : (num_conv - 1) x [conv3x3, relu]
    h = feat
    for i in range(num_conv - 1):
        h = jnp.maximum(conv3x3(h, wb_ref[i], bb_ref[i]), 0.0)

    # feat + block(feat)
    y_ref[0] = (feat + h).astype(y_ref.dtype)


def _stack_taps(w):
    """(O, I, 3, 3) conv weight -> (9*O, I); row block t = (ky*3+kx) is w[:,:,ky,kx]."""
    O, I = w.shape[0], w.shape[1]
    return jnp.transpose(w, (2, 3, 0, 1)).reshape(9 * O, I)


def res_block(x_nchw, params):
    """x_nchw: (B, C_in, H, W) f32 -> (B, C_out, H, W) f32."""
    B, C_in, H, W = x_nchw.shape
    w0 = params["w0"]
    C_out = w0.shape[0]
    num_conv = 1 + len(params["wb"])
    N = H * W

    # NCHW -> channel-major token layout (B, C, N): a contiguous reshape, no transpose.
    x_tok = x_nchw.reshape(B, C_in, N)

    w0_s = _stack_taps(w0)                                       # (9*C_out, C_in)
    b0_s = params["b0"].reshape(C_out, 1)

    n_blk = max(num_conv - 1, 1)
    if num_conv > 1:
        wb_s = jnp.stack([_stack_taps(w) for w in params["wb"]])  # (n_blk, 9*C_out, C_out)
        bb_s = jnp.stack([b.reshape(C_out, 1) for b in params["bb"]])
    else:  # dummy (unused) block params so shapes stay non-empty
        wb_s = jnp.zeros((1, 9 * C_out, C_out), jnp.float32)
        bb_s = jnp.zeros((1, C_out, 1), jnp.float32)

    # Precompute the 9 border-validity masks (same tap order as the kernel).
    hh, ww = jnp.meshgrid(jnp.arange(H), jnp.arange(W), indexing="ij")
    masks = []
    for dy in (-1, 0, 1):
        for dx in (-1, 0, 1):
            m = ((hh + dy >= 0) & (hh + dy < H) & (ww + dx >= 0) & (ww + dx < W))
            masks.append(m.reshape(1, N).astype(jnp.float32))
    masks = jnp.stack(masks)                                     # (9, 1, N)

    flops = 2 * B * N * 9 * (C_out * C_in + (num_conv - 1) * C_out * C_out)
    bytes_accessed = 4 * (x_tok.size + B * C_out * N + w0_s.size + b0_s.size
                          + wb_s.size + bb_s.size + masks.size)

    kernel = functools.partial(_resblock_kernel, H=H, W=W,
                               C_out=C_out, num_conv=num_conv)

    y_tok = pl.pallas_call(
        kernel,
        out_shape=jax.ShapeDtypeStruct((B, C_out, N), jnp.float32),
        grid_spec=pltpu.PrefetchScalarGridSpec(
            num_scalar_prefetch=0,
            grid=(B,),
            in_specs=[
                pl.BlockSpec((1, C_in, N), lambda b: (b, 0, 0)),          # x
                pl.BlockSpec((9 * C_out, C_in), lambda b: (0, 0)),        # W0 stacked
                pl.BlockSpec((C_out, 1), lambda b: (0, 0)),               # b0
                pl.BlockSpec((n_blk, 9 * C_out, C_out), lambda b: (0, 0, 0)),  # block Ws
                pl.BlockSpec((n_blk, C_out, 1), lambda b: (0, 0, 0)),     # block biases
                pl.BlockSpec((9, 1, N), lambda b: (0, 0, 0)),             # tap masks
            ],
            out_specs=pl.BlockSpec((1, C_out, N), lambda b: (b, 0, 0)),
        ),
        compiler_params=pltpu.CompilerParams(
            dimension_semantics=("parallel",)),
        cost_estimate=pl.CostEstimate(flops=flops, transcendentals=0,
                                      bytes_accessed=bytes_accessed),
    )(x_tok, w0_s, b0_s, wb_s, bb_s, masks)

    # channel-major tokens -> NCHW (again just a reshape).
    return y_tok.reshape(B, C_out, H, W)


# ----------------------------- plain-JAX reference -----------------------------

def _conv3x3_ref(x, w, b):
    y = jax.lax.conv_general_dilated(
        x, w, window_strides=(1, 1), padding=((1, 1), (1, 1)),
        dimension_numbers=("NCHW", "OIHW", "NCHW"),
        precision=jax.lax.Precision.HIGHEST)
    return y + b[None, :, None, None]


def res_block_ref(x, params):
    feat = _conv3x3_ref(x, params["w0"], params["b0"])
    h = feat
    for w, b in zip(params["wb"], params["bb"]):
        h = jax.nn.relu(_conv3x3_ref(h, w, b))
    return feat + h


def make_params(key, num_conv, in_channels, out_channels):
    ks = jax.random.split(key, 2 * num_conv)

    def u(k, shape, fan_in):
        s = 1.0 / jnp.sqrt(jnp.float32(fan_in))
        return jax.random.uniform(k, shape, jnp.float32, -s, s)

    params = {
        "w0": u(ks[0], (out_channels, in_channels, 3, 3), in_channels * 9),
        "b0": u(ks[1], (out_channels,), in_channels * 9),
        "wb": [],
        "bb": [],
    }
    for i in range(num_conv - 1):
        params["wb"].append(u(ks[2 + 2 * i], (out_channels, out_channels, 3, 3),
                              out_channels * 9))
        params["bb"].append(u(ks[3 + 2 * i], (out_channels,), out_channels * 9))
    return params


if __name__ == "__main__":
    B, C_in, C_out, H, W, num_conv = 2, 4, 8, 16, 16, 3
    root = jax.random.PRNGKey(0)
    k_x, k_p = jax.random.split(root)

    x = jax.random.normal(k_x, (B, C_in, H, W), dtype=jnp.float32)
    params = make_params(k_p, num_conv, C_in, C_out)

    y = res_block(x, params)
    y = jax.block_until_ready(y)

    y_ref = res_block_ref(x, params)
    assert y.shape == (B, C_out, H, W)
    # Loose-ish tolerance: the in-kernel MXU matmuls and the XLA reference conv
    # use different f32 accumulation/precision paths; any logic bug (wrong tap
    # shift / mask / residual) produces O(1) errors, far above this threshold.
    assert jnp.allclose(y, y_ref, rtol=2e-2, atol=2e-2), "mismatch vs reference"

    print("KERNEL_OK")
</pallas_src>

<mosaic_0001>
module attributes {stable_mosaic.version = 11 : i64} {
  func.func @_resblock_kernel(%arg0: i32, %arg1: memref<1x4x256xf32, #tpu.memory_space<vmem>>, %arg2: memref<72x4xf32, #tpu.memory_space<vmem>>, %arg3: memref<8x1xf32, #tpu.memory_space<vmem>>, %arg4: memref<2x72x8xf32, #tpu.memory_space<vmem>>, %arg5: memref<2x8x1xf32, #tpu.memory_space<vmem>>, %arg6: memref<9x1x256xf32, #tpu.memory_space<vmem>>, %arg7: memref<1x8x256xf32, #tpu.memory_space<vmem>>) attributes {dimension_semantics = [#tpu.dimension_semantics<parallel>], iteration_bounds = array<i64: 2>, scalar_prefetch = 0 : i64, scratch_operands = 0 : i64, tpu.core_type = #tpu.core_type<tc>, window_params = [{transform_indices = @transform_0, window_bounds = array<i64: 1, 4, 256>}, {pipeline_mode = #tpu.pipeline_mode<synchronous>, transform_indices = @transform_1, window_bounds = array<i64: 72, 4>}, {pipeline_mode = #tpu.pipeline_mode<synchronous>, transform_indices = @transform_2, window_bounds = array<i64: 8, 1>}, {pipeline_mode = #tpu.pipeline_mode<synchronous>, transform_indices = @transform_3, window_bounds = array<i64: 2, 72, 8>}, {pipeline_mode = #tpu.pipeline_mode<synchronous>, transform_indices = @transform_4, window_bounds = array<i64: 2, 8, 1>}, {pipeline_mode = #tpu.pipeline_mode<synchronous>, transform_indices = @transform_5, window_bounds = array<i64: 9, 1, 256>}, {transform_indices = @transform_6, window_bounds = array<i64: 1, 8, 256>}]} {
    %c0 = arith.constant 0 : index
    %c0_0 = arith.constant 0 : index
    %c0_1 = arith.constant 0 : index
    %0 = vector.load %arg1[%c0, %c0_0, %c0_1] : memref<1x4x256xf32, #tpu.memory_space<vmem>>, vector<1x4x256xf32>
    %1 = vector.shape_cast %0 : vector<1x4x256xf32> to vector<4x256xf32>
    %c0_2 = arith.constant 0 : index
    %c0_3 = arith.constant 0 : index
    %2 = vector.load %arg2[%c0_2, %c0_3] : memref<72x4xf32, #tpu.memory_space<vmem>>, vector<72x4xf32>
    %c0_4 = arith.constant 0 : index
    %c0_5 = arith.constant 0 : index
    %3 = vector.load %arg3[%c0_4, %c0_5] : memref<8x1xf32, #tpu.memory_space<vmem>>, vector<8x1xf32>
    %cst = arith.constant dense<0.000000e+00> : vector<72x256xf32>
    %4 = tpu.matmul %2, %1, %cst {dimension_numbers = #tpu.dot_dimension_numbers<[1], [0], [0], [1], [0, 0, 1, 1], [], []>} : vector<72x4xf32>, vector<4x256xf32>, vector<72x256xf32> -> vector<72x256xf32>
    %5 = vector.extract_strided_slice %4 {offsets = [0, 0], sizes = [8, 256], strides = [1, 1]} : vector<72x256xf32> to vector<8x256xf32>
    %c17_i32 = arith.constant 17 : i32
    %6 = tpu.dynamic_rotate %5 by %c17_i32 dim 1 : vector<8x256xf32>, i32 -> vector<8x256xf32>
    %c0_6 = arith.constant 0 : index
    %c0_7 = arith.constant 0 : index
    %c0_8 = arith.constant 0 : index
    %7 = vector.load %arg6[%c0_6, %c0_7, %c0_8] : memref<9x1x256xf32, #tpu.memory_space<vmem>>, vector<1x1x256xf32>
    %8 = vector.shape_cast %7 : vector<1x1x256xf32> to vector<1x256xf32>
    %9 = vector.broadcast %8 : vector<1x256xf32> to vector<8x256xf32>
    %10 = arith.mulf %6, %9 : vector<8x256xf32>
    %11 = vector.extract_strided_slice %4 {offsets = [8, 0], sizes = [8, 256], strides = [1, 1]} : vector<72x256xf32> to vector<8x256xf32>
    %c16_i32 = arith.constant 16 : i32
    %12 = tpu.dynamic_rotate %11 by %c16_i32 dim 1 : vector<8x256xf32>, i32 -> vector<8x256xf32>
    %c1 = arith.constant 1 : index
    %c0_9 = arith.constant 0 : index
    %c0_10 = arith.constant 0 : index
    %13 = vector.load %arg6[%c1, %c0_9, %c0_10] : memref<9x1x256xf32, #tpu.memory_space<vmem>>, vector<1x1x256xf32>
    %14 = vector.shape_cast %13 : vector<1x1x256xf32> to vector<1x256xf32>
    %15 = vector.broadcast %14 : vector<1x256xf32> to vector<8x256xf32>
    %16 = arith.mulf %12, %15 : vector<8x256xf32>
    %17 = arith.addf %10, %16 : vector<8x256xf32>
    %18 = vector.extract_strided_slice %4 {offsets = [16, 0], sizes = [8, 256], strides = [1, 1]} : vector<72x256xf32> to vector<8x256xf32>
    %c15_i32 = arith.constant 15 : i32
    %19 = tpu.dynamic_rotate %18 by %c15_i32 dim 1 : vector<8x256xf32>, i32 -> vector<8x256xf32>
    %c2 = arith.constant 2 : index
    %c0_11 = arith.constant 0 : index
    %c0_12 = arith.constant 0 : index
    %20 = vector.load %arg6[%c2, %c0_11, %c0_12] : memref<9x1x256xf32, #tpu.memory_space<vmem>>, vector<1x1x256xf32>
    %21 = vector.shape_cast %20 : vector<1x1x256xf32> to vector<1x256xf32>
    %22 = vector.broadcast %21 : vector<1x256xf32> to vector<8x256xf32>
    %23 = arith.mulf %19, %22 : vector<8x256xf32>
    %24 = arith.addf %17, %23 : vector<8x256xf32>
    %25 = vector.extract_strided_slice %4 {offsets = [24, 0], sizes = [8, 256], strides = [1, 1]} : vector<72x256xf32> to vector<8x256xf32>
    %c1_i32 = arith.constant 1 : i32
    %26 = tpu.dynamic_rotate %25 by %c1_i32 dim 1 : vector<8x256xf32>, i32 -> vector<8x256xf32>
    %c3 = arith.constant 3 : index
    %c0_13 = arith.constant 0 : index
    %c0_14 = arith.constant 0 : index
    %27 = vector.load %arg6[%c3, %c0_13, %c0_14] : memref<9x1x256xf32, #tpu.memory_space<vmem>>, vector<1x1x256xf32>
    %28 = vector.shape_cast %27 : vector<1x1x256xf32> to vector<1x256xf32>
    %29 = vector.broadcast %28 : vector<1x256xf32> to vector<8x256xf32>
    %30 = arith.mulf %26, %29 : vector<8x256xf32>
    %31 = arith.addf %24, %30 : vector<8x256xf32>
    %32 = vector.extract_strided_slice %4 {offsets = [32, 0], sizes = [8, 256], strides = [1, 1]} : vector<72x256xf32> to vector<8x256xf32>
    %c4 = arith.constant 4 : index
    %c0_15 = arith.constant 0 : index
    %c0_16 = arith.constant 0 : index
    %33 = vector.load %arg6[%c4, %c0_15, %c0_16] : memref<9x1x256xf32, #tpu.memory_space<vmem>>, vector<1x1x256xf32>
    %34 = vector.shape_cast %33 : vector<1x1x256xf32> to vector<1x256xf32>
    %35 = vector.broadcast %34 : vector<1x256xf32> to vector<8x256xf32>
    %36 = arith.mulf %32, %35 : vector<8x256xf32>
    %37 = arith.addf %31, %36 : vector<8x256xf32>
    %38 = vector.extract_strided_slice %4 {offsets = [40, 0], sizes = [8, 256], strides = [1, 1]} : vector<72x256xf32> to vector<8x256xf32>
    %c255_i32 = arith.constant 255 : i32
    %39 = tpu.dynamic_rotate %38 by %c255_i32 dim 1 : vector<8x256xf32>, i32 -> vector<8x256xf32>
    %c5 = arith.constant 5 : index
    %c0_17 = arith.constant 0 : index
    %c0_18 = arith.constant 0 : index
    %40 = vector.load %arg6[%c5, %c0_17, %c0_18] : memref<9x1x256xf32, #tpu.memory_space<vmem>>, vector<1x1x256xf32>
    %41 = vector.shape_cast %40 : vector<1x1x256xf32> to vector<1x256xf32>
    %42 = vector.broadcast %41 : vector<1x256xf32> to vector<8x256xf32>
    %43 = arith.mulf %39, %42 : vector<8x256xf32>
    %44 = arith.addf %37, %43 : vector<8x256xf32>
    %45 = vector.extract_strided_slice %4 {offsets = [48, 0], sizes = [8, 256], strides = [1, 1]} : vector<72x256xf32> to vector<8x256xf32>
    %c241_i32 = arith.constant 241 : i32
    %46 = tpu.dynamic_rotate %45 by %c241_i32 dim 1 : vector<8x256xf32>, i32 -> vector<8x256xf32>
    %c6 = arith.constant 6 : index
    %c0_19 = arith.constant 0 : index
    %c0_20 = arith.constant 0 : index
    %47 = vector.load %arg6[%c6, %c0_19, %c0_20] : memref<9x1x256xf32, #tpu.memory_space<vmem>>, vector<1x1x256xf32>
    %48 = vector.shape_cast %47 : vector<1x1x256xf32> to vector<1x256xf32>
    %49 = vector.broadcast %48 : vector<1x256xf32> to vector<8x256xf32>
    %50 = arith.mulf %46, %49 : vector<8x256xf32>
    %51 = arith.addf %44, %50 : vector<8x256xf32>
    %52 = vector.extract_strided_slice %4 {offsets = [56, 0], sizes = [8, 256], strides = [1, 1]} : vector<72x256xf32> to vector<8x256xf32>
    %c240_i32 = arith.constant 240 : i32
    %53 = tpu.dynamic_rotate %52 by %c240_i32 dim 1 : vector<8x256xf32>, i32 -> vector<8x256xf32>
    %c7 = arith.constant 7 : index
    %c0_21 = arith.constant 0 : index
    %c0_22 = arith.constant 0 : index
    %54 = vector.load %arg6[%c7, %c0_21, %c0_22] : memref<9x1x256xf32, #tpu.memory_space<vmem>>, vector<1x1x256xf32>
    %55 = vector.shape_cast %54 : vector<1x1x256xf32> to vector<1x256xf32>
    %56 = vector.broadcast %55 : vector<1x256xf32> to vector<8x256xf32>
    %57 = arith.mulf %53, %56 : vector<8x256xf32>
    %58 = arith.addf %51, %57 : vector<8x256xf32>
    %59 = vector.extract_strided_slice %4 {offsets = [64, 0], sizes = [8, 256], strides = [1, 1]} : vector<72x256xf32> to vector<8x256xf32>
    %c239_i32 = arith.constant 239 : i32
    %60 = tpu.dynamic_rotate %59 by %c239_i32 dim 1 : vector<8x256xf32>, i32 -> vector<8x256xf32>
    %c8 = arith.constant 8 : index
    %c0_23 = arith.constant 0 : index
    %c0_24 = arith.constant 0 : index
    %61 = vector.load %arg6[%c8, %c0_23, %c0_24] : memref<9x1x256xf32, #tpu.memory_space<vmem>>, vector<1x1x256xf32>
    %62 = vector.shape_cast %61 : vector<1x1x256xf32> to vector<1x256xf32>
    %63 = vector.broadcast %62 : vector<1x256xf32> to vector<8x256xf32>
    %64 = arith.mulf %60, %63 : vector<8x256xf32>
    %65 = arith.addf %58, %64 : vector<8x256xf32>
    %66 = vector.broadcast %3 : vector<8x1xf32> to vector<8x256xf32>
    %67 = arith.addf %65, %66 : vector<8x256xf32>
    %c0_25 = arith.constant 0 : index
    %c0_26 = arith.constant 0 : index
    %c0_27 = arith.constant 0 : index
    %68 = vector.load %arg4[%c0_25, %c0_26, %c0_27] : memref<2x72x8xf32, #tpu.memory_space<vmem>>, vector<1x72x8xf32>
    %69 = vector.shape_cast %68 : vector<1x72x8xf32> to vector<72x8xf32>
    %c0_28 = arith.constant 0 : index
    %c0_29 = arith.constant 0 : index
    %c0_30 = arith.constant 0 : index
    %70 = vector.load %arg5[%c0_28, %c0_29, %c0_30] : memref<2x8x1xf32, #tpu.memory_space<vmem>>, vector<1x8x1xf32>
    %71 = vector.shape_cast %70 : vector<1x8x1xf32> to vector<8x1xf32>
    %cst_31 = arith.constant dense<0.000000e+00> : vector<72x256xf32>
    %72 = tpu.matmul %69, %67, %cst_31 {dimension_numbers = #tpu.dot_dimension_numbers<[1], [0], [0], [1], [0, 0, 1, 1], [], []>} : vector<72x8xf32>, vector<8x256xf32>, vector<72x256xf32> -> vector<72x256xf32>
    %73 = vector.extract_strided_slice %72 {offsets = [0, 0], sizes = [8, 256], strides = [1, 1]} : vector<72x256xf32> to vector<8x256xf32>
    %c17_i32_32 = arith.constant 17 : i32
    %74 = tpu.dynamic_rotate %73 by %c17_i32_32 dim 1 : vector<8x256xf32>, i32 -> vector<8x256xf32>
    %c0_33 = arith.constant 0 : index
    %c0_34 = arith.constant 0 : index
    %c0_35 = arith.constant 0 : index
    %75 = vector.load %arg6[%c0_33, %c0_34, %c0_35] : memref<9x1x256xf32, #tpu.memory_space<vmem>>, vector<1x1x256xf32>
    %76 = vector.shape_cast %75 : vector<1x1x256xf32> to vector<1x256xf32>
    %77 = vector.broadcast %76 : vector<1x256xf32> to vector<8x256xf32>
    %78 = arith.mulf %74, %77 : vector<8x256xf32>
    %79 = vector.extract_strided_slice %72 {offsets = [8, 0], sizes = [8, 256], strides = [1, 1]} : vector<72x256xf32> to vector<8x256xf32>
    %c16_i32_36 = arith.constant 16 : i32
    %80 = tpu.dynamic_rotate %79 by %c16_i32_36 dim 1 : vector<8x256xf32>, i32 -> vector<8x256xf32>
    %c1_37 = arith.constant 1 : index
    %c0_38 = arith.constant 0 : index
    %c0_39 = arith.constant 0 : index
    %81 = vector.load %arg6[%c1_37, %c0_38, %c0_39] : memref<9x1x256xf32, #tpu.memory_space<vmem>>, vector<1x1x256xf32>
    %82 = vector.shape_cast %81 : vector<1x1x256xf32> to vector<1x256xf32>
    %83 = vector.broadcast %82 : vector<1x256xf32> to vector<8x256xf32>
    %84 = arith.mulf %80, %83 : vector<8x256xf32>
    %85 = arith.addf %78, %84 : vector<8x256xf32>
    %86 = vector.extract_strided_slice %72 {offsets = [16, 0], sizes = [8, 256], strides = [1, 1]} : vector<72x256xf32> to vector<8x256xf32>
    %c15_i32_40 = arith.constant 15 : i32
    %87 = tpu.dynamic_rotate %86 by %c15_i32_40 dim 1 : vector<8x256xf32>, i32 -> vector<8x256xf32>
    %c2_41 = arith.constant 2 : index
    %c0_42 = arith.constant 0 : index
    %c0_43 = arith.constant 0 : index
    %88 = vector.load %arg6[%c2_41, %c0_42, %c0_43] : memref<9x1x256xf32, #tpu.memory_space<vmem>>, vector<1x1x256xf32>
    %89 = vector.shape_cast %88 : vector<1x1x256xf32> to vector<1x256xf32>
    %90 = vector.broadcast %89 : vector<1x256xf32> to vector<8x256xf32>
    %91 = arith.mulf %87, %90 : vector<8x256xf32>
    %92 = arith.addf %85, %91 : vector<8x256xf32>
    %93 = vector.extract_strided_slice %72 {offsets = [24, 0], sizes = [8, 256], strides = [1, 1]} : vector<72x256xf32> to vector<8x256xf32>
    %c1_i32_44 = arith.constant 1 : i32
    %94 = tpu.dynamic_rotate %93 by %c1_i32_44 dim 1 : vector<8x256xf32>, i32 -> vector<8x256xf32>
    %c3_45 = arith.constant 3 : index
    %c0_46 = arith.constant 0 : index
    %c0_47 = arith.constant 0 : index
    %95 = vector.load %arg6[%c3_45, %c0_46, %c0_47] : memref<9x1x256xf32, #tpu.memory_space<vmem>>, vector<1x1x256xf32>
    %96 = vector.shape_cast %95 : vector<1x1x256xf32> to vector<1x256xf32>
    %97 = vector.broadcast %96 : vector<1x256xf32> to vector<8x256xf32>
    %98 = arith.mulf %94, %97 : vector<8x256xf32>
    %99 = arith.addf %92, %98 : vector<8x256xf32>
    %100 = vector.extract_strided_slice %72 {offsets = [32, 0], sizes = [8, 256], strides = [1, 1]} : vector<72x256xf32> to vector<8x256xf32>
    %c4_48 = arith.constant 4 : index
    %c0_49 = arith.constant 0 : index
    %c0_50 = arith.constant 0 : index
    %101 = vector.load %arg6[%c4_48, %c0_49, %c0_50] : memref<9x1x256xf32, #tpu.memory_space<vmem>>, vector<1x1x256xf32>
    %102 = vector.shape_cast %101 : vector<1x1x256xf32> to vector<1x256xf32>
    %103 = vector.broadcast %102 : vector<1x256xf32> to vector<8x256xf32>
    %104 = arith.mulf %100, %103 : vector<8x256xf32>
    %105 = arith.addf %99, %104 : vector<8x256xf32>
    %106 = vector.extract_strided_slice %72 {offsets = [40, 0], sizes = [8, 256], strides = [1, 1]} : vector<72x256xf32> to vector<8x256xf32>
    %c255_i32_51 = arith.constant 255 : i32
    %107 = tpu.dynamic_rotate %106 by %c255_i32_51 dim 1 : vector<8x256xf32>, i32 -> vector<8x256xf32>
    %c5_52 = arith.constant 5 : index
    %c0_53 = arith.constant 0 : index
    %c0_54 = arith.constant 0 : index
    %108 = vector.load %arg6[%c5_52, %c0_53, %c0_54] : memref<9x1x256xf32, #tpu.memory_space<vmem>>, vector<1x1x256xf32>
    %109 = vector.shape_cast %108 : vector<1x1x256xf32> to vector<1x256xf32>
    %110 = vector.broadcast %109 : vector<1x256xf32> to vector<8x256xf32>
    %111 = arith.mulf %107, %110 : vector<8x256xf32>
    %112 = arith.addf %105, %111 : vector<8x256xf32>
    %113 = vector.extract_strided_slice %72 {offsets = [48, 0], sizes = [8, 256], strides = [1, 1]} : vector<72x256xf32> to vector<8x256xf32>
    %c241_i32_55 = arith.constant 241 : i32
    %114 = tpu.dynamic_rotate %113 by %c241_i32_55 dim 1 : vector<8x256xf32>, i32 -> vector<8x256xf32>
    %c6_56 = arith.constant 6 : index
    %c0_57 = arith.constant 0 : index
    %c0_58 = arith.constant 0 : index
    %115 = vector.load %arg6[%c6_56, %c0_57, %c0_58] : memref<9x1x256xf32, #tpu.memory_space<vmem>>, vector<1x1x256xf32>
    %116 = vector.shape_cast %115 : vector<1x1x256xf32> to vector<1x256xf32>
    %117 = vector.broadcast %116 : vector<1x256xf32> to vector<8x256xf32>
    %118 = arith.mulf %114, %117 : vector<8x256xf32>
    %119 = arith.addf %112, %118 : vector<8x256xf32>
    %120 = vector.extract_strided_slice %72 {offsets = [56, 0], sizes = [8, 256], strides = [1, 1]} : vector<72x256xf32> to vector<8x256xf32>
    %c240_i32_59 = arith.constant 240 : i32
    %121 = tpu.dynamic_rotate %120 by %c240_i32_59 dim 1 : vector<8x256xf32>, i32 -> vector<8x256xf32>
    %c7_60 = arith.constant 7 : index
    %c0_61 = arith.constant 0 : index
    %c0_62 = arith.constant 0 : index
    %122 = vector.load %arg6[%c7_60, %c0_61, %c0_62] : memref<9x1x256xf32, #tpu.memory_space<vmem>>, vector<1x1x256xf32>
    %123 = vector.shape_cast %122 : vector<1x1x256xf32> to vector<1x256xf32>
    %124 = vector.broadcast %123 : vector<1x256xf32> to vector<8x256xf32>
    %125 = arith.mulf %121, %124 : vector<8x256xf32>
    %126 = arith.addf %119, %125 : vector<8x256xf32>
    %127 = vector.extract_strided_slice %72 {offsets = [64, 0], sizes = [8, 256], strides = [1, 1]} : vector<72x256xf32> to vector<8x256xf32>
    %c239_i32_63 = arith.constant 239 : i32
    %128 = tpu.dynamic_rotate %127 by %c239_i32_63 dim 1 : vector<8x256xf32>, i32 -> vector<8x256xf32>
    %c8_64 = arith.constant 8 : index
    %c0_65 = arith.constant 0 : index
    %c0_66 = arith.constant 0 : index
    %129 = vector.load %arg6[%c8_64, %c0_65, %c0_66] : memref<9x1x256xf32, #tpu.memory_space<vmem>>, vector<1x1x256xf32>
    %130 = vector.shape_cast %129 : vector<1x1x256xf32> to vector<1x256xf32>
    %131 = vector.broadcast %130 : vector<1x256xf32> to vector<8x256xf32>
    %132 = arith.mulf %128, %131 : vector<8x256xf32>
    %133 = arith.addf %126, %132 : vector<8x256xf32>
    %134 = vector.broadcast %71 : vector<8x1xf32> to vector<8x256xf32>
    %135 = arith.addf %133, %134 : vector<8x256xf32>
    %cst_67 = arith.constant 0.000000e+00 : f32
    %136 = vector.broadcast %cst_67 : f32 to vector<8x256xf32>
    %137 = arith.maximumf %135, %136 : vector<8x256xf32>
    %c1_68 = arith.constant 1 : index
    %c0_69 = arith.constant 0 : index
    %c0_70 = arith.constant 0 : index
    %138 = vector.load %arg4[%c1_68, %c0_69, %c0_70] : memref<2x72x8xf32, #tpu.memory_space<vmem>>, vector<1x72x8xf32>
    %139 = vector.shape_cast %138 : vector<1x72x8xf32> to vector<72x8xf32>
    %c1_71 = arith.constant 1 : index
    %c0_72 = arith.constant 0 : index
    %c0_73 = arith.constant 0 : index
    %140 = vector.load %arg5[%c1_71, %c0_72, %c0_73] : memref<2x8x1xf32, #tpu.memory_space<vmem>>, vector<1x8x1xf32>
    %141 = vector.shape_cast %140 : vector<1x8x1xf32> to vector<8x1xf32>
    %cst_74 = arith.constant dense<0.000000e+00> : vector<72x256xf32>
    %142 = tpu.matmul %139, %137, %cst_74 {dimension_numbers = #tpu.dot_dimension_numbers<[1], [0], [0], [1], [0, 0, 1, 1], [], []>} : vector<72x8xf32>, vector<8x256xf32>, vector<72x256xf32> -> vector<72x256xf32>
    %143 = vector.extract_strided_slice %142 {offsets = [0, 0], sizes = [8, 256], strides = [1, 1]} : vector<72x256xf32> to vector<8x256xf32>
    %c17_i32_75 = arith.constant 17 : i32
    %144 = tpu.dynamic_rotate %143 by %c17_i32_75 dim 1 : vector<8x256xf32>, i32 -> vector<8x256xf32>
    %c0_76 = arith.constant 0 : index
    %c0_77 = arith.constant 0 : index
    %c0_78 = arith.constant 0 : index
    %145 = vector.load %arg6[%c0_76, %c0_77, %c0_78] : memref<9x1x256xf32, #tpu.memory_space<vmem>>, vector<1x1x256xf32>
    %146 = vector.shape_cast %145 : vector<1x1x256xf32> to vector<1x256xf32>
    %147 = vector.broadcast %146 : vector<1x256xf32> to vector<8x256xf32>
    %148 = arith.mulf %144, %147 : vector<8x256xf32>
    %149 = vector.extract_strided_slice %142 {offsets = [8, 0], sizes = [8, 256], strides = [1, 1]} : vector<72x256xf32> to vector<8x256xf32>
    %c16_i32_79 = arith.constant 16 : i32
    %150 = tpu.dynamic_rotate %149 by %c16_i32_79 dim 1 : vector<8x256xf32>, i32 -> vector<8x256xf32>
    %c1_80 = arith.constant 1 : index
    %c0_81 = arith.constant 0 : index
    %c0_82 = arith.constant 0 : index
    %151 = vector.load %arg6[%c1_80, %c0_81, %c0_82] : memref<9x1x256xf32, #tpu.memory_space<vmem>>, vector<1x1x256xf32>
    %152 = vector.shape_cast %151 : vector<1x1x256xf32> to vector<1x256xf32>
    %153 = vector.broadcast %152 : vector<1x256xf32> to vector<8x256xf32>
    %154 = arith.mulf %150, %153 : vector<8x256xf32>
    %155 = arith.addf %148, %154 : vector<8x256xf32>
    %156 = vector.extract_strided_slice %142 {offsets = [16, 0], sizes = [8, 256], strides = [1, 1]} : vector<72x256xf32> to vector<8x256xf32>
    %c15_i32_83 = arith.constant 15 : i32
    %157 = tpu.dynamic_rotate %156 by %c15_i32_83 dim 1 : vector<8x256xf32>, i32 -> vector<8x256xf32>
    %c2_84 = arith.constant 2 : index
    %c0_85 = arith.constant 0 : index
    %c0_86 = arith.constant 0 : index
    %158 = vector.load %arg6[%c2_84, %c0_85, %c0_86] : memref<9x1x256xf32, #tpu.memory_space<vmem>>, vector<1x1x256xf32>
    %159 = vector.shape_cast %158 : vector<1x1x256xf32> to vector<1x256xf32>
    %160 = vector.broadcast %159 : vector<1x256xf32> to vector<8x256xf32>
    %161 = arith.mulf %157, %160 : vector<8x256xf32>
    %162 = arith.addf %155, %161 : vector<8x256xf32>
    %163 = vector.extract_strided_slice %142 {offsets = [24, 0], sizes = [8, 256], strides = [1, 1]} : vector<72x256xf32> to vector<8x256xf32>
    %c1_i32_87 = arith.constant 1 : i32
    %164 = tpu.dynamic_rotate %163 by %c1_i32_87 dim 1 : vector<8x256xf32>, i32 -> vector<8x256xf32>
    %c3_88 = arith.constant 3 : index
    %c0_89 = arith.constant 0 : index
    %c0_90 = arith.constant 0 : index
    %165 = vector.load %arg6[%c3_88, %c0_89, %c0_90] : memref<9x1x256xf32, #tpu.memory_space<vmem>>, vector<1x1x256xf32>
    %166 = vector.shape_cast %165 : vector<1x1x256xf32> to vector<1x256xf32>
    %167 = vector.broadcast %166 : vector<1x256xf32> to vector<8x256xf32>
    %168 = arith.mulf %164, %167 : vector<8x256xf32>
    %169 = arith.addf %162, %168 : vector<8x256xf32>
    %170 = vector.extract_strided_slice %142 {offsets = [32, 0], sizes = [8, 256], strides = [1, 1]} : vector<72x256xf32> to vector<8x256xf32>
    %c4_91 = arith.constant 4 : index
    %c0_92 = arith.constant 0 : index
    %c0_93 = arith.constant 0 : index
    %171 = vector.load %arg6[%c4_91, %c0_92, %c0_93] : memref<9x1x256xf32, #tpu.memory_space<vmem>>, vector<1x1x256xf32>
    %172 = vector.shape_cast %171 : vector<1x1x256xf32> to vector<1x256xf32>
    %173 = vector.broadcast %172 : vector<1x256xf32> to vector<8x256xf32>
    %174 = arith.mulf %170, %173 : vector<8x256xf32>
    %175 = arith.addf %169, %174 : vector<8x256xf32>
    %176 = vector.extract_strided_slice %142 {offsets = [40, 0], sizes = [8, 256], strides = [1, 1]} : vector<72x256xf32> to vector<8x256xf32>
    %c255_i32_94 = arith.constant 255 : i32
    %177 = tpu.dynamic_rotate %176 by %c255_i32_94 dim 1 : vector<8x256xf32>, i32 -> vector<8x256xf32>
    %c5_95 = arith.constant 5 : index
    %c0_96 = arith.constant 0 : index
    %c0_97 = arith.constant 0 : index
    %178 = vector.load %arg6[%c5_95, %c0_96, %c0_97] : memref<9x1x256xf32, #tpu.memory_space<vmem>>, vector<1x1x256xf32>
    %179 = vector.shape_cast %178 : vector<1x1x256xf32> to vector<1x256xf32>
    %180 = vector.broadcast %179 : vector<1x256xf32> to vector<8x256xf32>
    %181 = arith.mulf %177, %180 : vector<8x256xf32>
    %182 = arith.addf %175, %181 : vector<8x256xf32>
    %183 = vector.extract_strided_slice %142 {offsets = [48, 0], sizes = [8, 256], strides = [1, 1]} : vector<72x256xf32> to vector<8x256xf32>
    %c241_i32_98 = arith.constant 241 : i32
    %184 = tpu.dynamic_rotate %183 by %c241_i32_98 dim 1 : vector<8x256xf32>, i32 -> vector<8x256xf32>
    %c6_99 = arith.constant 6 : index
    %c0_100 = arith.constant 0 : index
    %c0_101 = arith.constant 0 : index
    %185 = vector.load %arg6[%c6_99, %c0_100, %c0_101] : memref<9x1x256xf32, #tpu.memory_space<vmem>>, vector<1x1x256xf32>
    %186 = vector.shape_cast %185 : vector<1x1x256xf32> to vector<1x256xf32>
    %187 = vector.broadcast %186 : vector<1x256xf32> to vector<8x256xf32>
    %188 = arith.mulf %184, %187 : vector<8x256xf32>
    %189 = arith.addf %182, %188 : vector<8x256xf32>
    %190 = vector.extract_strided_slice %142 {offsets = [56, 0], sizes = [8, 256], strides = [1, 1]} : vector<72x256xf32> to vector<8x256xf32>
    %c240_i32_102 = arith.constant 240 : i32
    %191 = tpu.dynamic_rotate %190 by %c240_i32_102 dim 1 : vector<8x256xf32>, i32 -> vector<8x256xf32>
    %c7_103 = arith.constant 7 : index
    %c0_104 = arith.constant 0 : index
    %c0_105 = arith.constant 0 : index
    %192 = vector.load %arg6[%c7_103, %c0_104, %c0_105] : memref<9x1x256xf32, #tpu.memory_space<vmem>>, vector<1x1x256xf32>
    %193 = vector.shape_cast %192 : vector<1x1x256xf32> to vector<1x256xf32>
    %194 = vector.broadcast %193 : vector<1x256xf32> to vector<8x256xf32>
    %195 = arith.mulf %191, %194 : vector<8x256xf32>
    %196 = arith.addf %189, %195 : vector<8x256xf32>
    %197 = vector.extract_strided_slice %142 {offsets = [64, 0], sizes = [8, 256], strides = [1, 1]} : vector<72x256xf32> to vector<8x256xf32>
    %c239_i32_106 = arith.constant 239 : i32
    %198 = tpu.dynamic_rotate %197 by %c239_i32_106 dim 1 : vector<8x256xf32>, i32 -> vector<8x256xf32>
    %c8_107 = arith.constant 8 : index
    %c0_108 = arith.constant 0 : index
    %c0_109 = arith.constant 0 : index
    %199 = vector.load %arg6[%c8_107, %c0_108, %c0_109] : memref<9x1x256xf32, #tpu.memory_space<vmem>>, vector<1x1x256xf32>
    %200 = vector.shape_cast %199 : vector<1x1x256xf32> to vector<1x256xf32>
    %201 = vector.broadcast %200 : vector<1x256xf32> to vector<8x256xf32>
    %202 = arith.mulf %198, %201 : vector<8x256xf32>
    %203 = arith.addf %196, %202 : vector<8x256xf32>
    %204 = vector.broadcast %141 : vector<8x1xf32> to vector<8x256xf32>
    %205 = arith.addf %203, %204 : vector<8x256xf32>
    %cst_110 = arith.constant 0.000000e+00 : f32
    %206 = vector.broadcast %cst_110 : f32 to vector<8x256xf32>
    %207 = arith.maximumf %205, %206 : vector<8x256xf32>
    %208 = arith.addf %67, %207 : vector<8x256xf32>
    %c0_111 = arith.constant 0 : index
    %c0_112 = arith.constant 0 : index
    %c0_113 = arith.constant 0 : index
    %209 = vector.load %arg7[%c0_111, %c0_112, %c0_113] : memref<1x8x256xf32, #tpu.memory_space<vmem>>, vector<1x8x256xf32>
    %210 = vector.shape_cast %209 : vector<1x8x256xf32> to vector<8x256xf32>
    %211 = vector.shape_cast %208 : vector<8x256xf32> to vector<1x8x256xf32>
    tpu.vector_store %arg7[%c0_111, %c0_112, %c0_113], %211 {strides = array<i32>} : memref<1x8x256xf32, #tpu.memory_space<vmem>>, vector<1x8x256xf32>,
    return
  }
  func.func @transform_0(%arg0: i32) -> (i32, i32, i32) {
    %c0_i32 = arith.constant 0 : i32
    %c0_i32_0 = arith.constant 0 : i32
    %c0_i32_1 = arith.constant 0 : i32
    return %arg0, %c0_i32, %c0_i32_0 : i32, i32, i32
  }
  func.func @transform_1(%arg0: i32) -> (i32, i32) {
    %c0_i32 = arith.constant 0 : i32
    %c0_i32_0 = arith.constant 0 : i32
    %c0_i32_1 = arith.constant 0 : i32
    return %c0_i32, %c0_i32_0 : i32, i32
  }
  func.func @transform_2(%arg0: i32) -> (i32, i32) {
    %c0_i32 = arith.constant 0 : i32
    %c0_i32_0 = arith.constant 0 : i32
    %c0_i32_1 = arith.constant 0 : i32
    return %c0_i32, %c0_i32_0 : i32, i32
  }
  func.func @transform_3(%arg0: i32) -> (i32, i32, i32) {
    %c0_i32 = arith.constant 0 : i32
    %c0_i32_0 = arith.constant 0 : i32
    %c0_i32_1 = arith.constant 0 : i32
    %c0_i32_2 = arith.constant 0 : i32
    return %c0_i32, %c0_i32_0, %c0_i32_1 : i32, i32, i32
  }
  func.func @transform_4(%arg0: i32) -> (i32, i32, i32) {
    %c0_i32 = arith.constant 0 : i32
    %c0_i32_0 = arith.constant 0 : i32
    %c0_i32_1 = arith.constant 0 : i32
    %c0_i32_2 = arith.constant 0 : i32
    return %c0_i32, %c0_i32_0, %c0_i32_1 : i32, i32, i32
  }
  func.func @transform_5(%arg0: i32) -> (i32, i32, i32) {
    %c0_i32 = arith.constant 0 : i32
    %c0_i32_0 = arith.constant 0 : i32
    %c0_i32_1 = arith.constant 0 : i32
    %c0_i32_2 = arith.constant 0 : i32
    return %c0_i32, %c0_i32_0, %c0_i32_1 : i32, i32, i32
  }
  func.func @transform_6(%arg0: i32) -> (i32, i32, i32) {
    %c0_i32 = arith.constant 0 : i32
    %c0_i32_0 = arith.constant 0 : i32
    %c0_i32_1 = arith.constant 0 : i32
    return %arg0, %c0_i32, %c0_i32_0 : i32, i32, i32
  }
}

</mosaic_0001>

<bundles_post_ra>
// kernel: tpu_custom_call.1
= control target key start
LH: loop header
LB: loop body
LE: loop exit
PB: predicated region body
PF: predicated region fallthrough
CT: control target
= control target key end

     0   :  { %11 = vsyncpa [#allocation3], 0  ;;  %s1997_s0 = inlined_call_operand.vmem [shape: f32[2,4,256], index: 0, kind: input, shape index: {}]   ;;  %s1998_s1 = inlined_call_operand.vmem [shape: f32[72,4], index: 1, kind: input, shape index: {}]   ;;  %s1999_s2 = inlined_call_operand.vmem [shape: f32[8,1], index: 2, kind: input, shape index: {}]   ;;  %s2000_s3 = inlined_call_operand.vmem [shape: f32[2,72,8], index: 3, kind: input, shape index: {}]   ;;  %s2001_s4 = inlined_call_operand.vmem [shape: f32[2,8,1], index: 4, kind: input, shape index: {}]   ;;  %s2002_s5 = inlined_call_operand.vmem [shape: f32[9,1,256], index: 5, kind: input, shape index: {}]   ;;  %s2003_s6 = inlined_call_operand.hbm [shape: f32[2,8,256], index: 6, kind: output, shape index: {}]  }
   0x1   :  { %13 = vsyncpa [#allocation3 + $0x1], 0  ;;  %s1430_s21 = smov 0   ;;  %s1432_s22 = smov 0  }
   0x2   :  { %s1434_s23 = smov 0   ;;  %s1436_s24 = smov 0  }
   0x3 LB: > { %s1451_s25 = sadd.s32 4294967295, %s1382_s24   ;;  %s1205_s26 = sadd.s32 4294967294, %s1382_s24   ;;  %s1382_s24 = sphi %s1436_s24, %s2009_s24   ;;  %s1378_s23 = sphi %s1434_s23, %s2008_s23   ;;  %s1374_s22 = sphi %s1432_s22, %s2007_s22   ;;  %s1370_s21 = sphi %s1430_s21, %s2006_s21  }
   0x4   : > { %s1455_s27 = sadd.s32 1, %s1382_s24   ;;  %s157_s28 = sadd.s32 1, %s1378_s23 }
   0x5   : > { %s154_s29 = ssub.s32 %s1382_s24, %s1455_s27  ;;  %p167_p0 = scmp.ne.s32.totalorder %s1378_s23, %s1374_s22 }
   0x6   : > { %p155_p1 = scmp.eq.s32.totalorder %s154_s29, 0  ;;  %p168_p2 = scmp.eq.s32.totalorder %s1451_s25, 1 }
   0x7   : > { %p173_p3 = scmp.ne.s32.totalorder %s1374_s22, %s1370_s21  ;;  %p174_p4 = scmp.eq.s32.totalorder %s1205_s26, 1 }
   0x8   : > { %s1466_s30 = scalar_select %p155_p1, %s1378_s23, %s157_s28  }
   0x9   : > { %p1468_p5 = por %p168_p2, %p167_p0  ;;  %p1472_p6 = por %p174_p4, %p173_p3 }
   0xa   : > { %p1208_p7 = scmp.ge.s32.totalorder %s1382_s24, 1  ;;  %p215_p8 = scmp.lt.s32.totalorder %s1382_s24, 3 }
   0xc   : > { %p216_p9 = pnand %p1208_p7, %p215_p8 }
   0xd   : > { %p245_p10 = scmp.lt.s32.totalorder (!%p216_p9), %s1451_s25, 1  ;;  %v1384_v0 = vmov (!%p216_p9), 0.0   ;;  %vm291_vm0 = vcmask (!%p216_p9), 1043456   ;;  %v251_v3 = vld [vmem:[%s1998_s1] sm:$0xff] (!%p216_p9)  ;;  %vm263_vm1 = vcmask (!%p216_p9), 31744   ;;  %v256_v4 = vld [vmem:[%s1998_s1 + $0x28] sm:$0xff] (!%p216_p9)  ;;  %v419_v35 = vlaneseq (!%p216_p9) }
   0xe   : > { %219 = sbr.rel (%p216_p9) target bundleno = 1158 (0x486), region = 44  ;;  %360 = vmatprep.mubr.f32.mxu0 (!%p216_p9), %v1384_v0  ;;  %390 = vmatprep.mubr.f32.mxu1 (!%p216_p9), %v1384_v0  ;;  %v252_v5 = vld [vmem:[%s1998_s1 + $0x8] sm:$0xff] (!%p216_p9)  ;;  %v257_v6 = vld [vmem:[%s1998_s1 + $0x30] sm:$0xff] (!%p216_p9)  ;;  %v258_v8 = vld [vmem:[%s1998_s1 + $0x38] sm:$0xff] (!%p216_p9)  ;;  %v1385_v12 = vmov (!%p216_p9), 0   ;;  %s1386_s17 = smov (!%p216_p9), 17  }
   0xf   : > { %v253_v7 = vld [vmem:[%s1998_s1 + $0x10] sm:$0xff] (!%p216_p9)  ;;  %v254_v9 = vld [vmem:[%s1998_s1 + $0x18] sm:$0xff] (!%p216_p9)  ;;  %v259_v10 = vld [vmem:[%s1998_s1 + $0x40] sm:$0xff] (!%p216_p9)  ;;  %1317 = vset.pattern.permute.xlu0 (!%p216_p9), %v1385_v12  ;;  %1318 = vset.pattern.permute.xlu1 (!%p216_p9), %v1385_v12  ;;  %s1387_s18 = smov (!%p216_p9), 127   ;;  %s1388_s19 = smov (!%p216_p9), 16   ;;  %v427_v38 = vshrl.u32 (!%p216_p9), %v419_v35, 7 }
  0x10   : > { %v255_v11 = vld [vmem:[%s1998_s1 + $0x20] sm:$0xff] (!%p216_p9)  ;;  %s1389_s20 = smov (!%p216_p9), 113   ;;  %s1390_s26 = smov (!%p216_p9), 15   ;;  %v1558_v40 = vand.u32 (!%p216_p9), 127, %v419_v35  ;;  %v1226_v59 = vld [vmem:[%s2002_s5 + $0x8] sm:$0x3] (!%p216_p9) }
  0x11   : > { %s1391_s28 = smov (!%p216_p9), 1   ;;  %s1392_s29 = smov (!%p216_p9), 112   ;;  %v260_v31 = vld [vmem:[%s1999_s2] sm:$0xff] (!%p216_p9)  ;;  %v1566_v44 = vsub.s32 (!%p216_p9), 0, %v427_v38  ;;  %v1568_v45 = vsub.s32 (!%p216_p9), 1, %v427_v38  ;;  %vm640_vm10 = vcmask (!%p216_p9), 64512  }
  0x12   : > { %s1393_s11 = smov (!%p216_p9), 111   ;;  %v639_v32 = vld [vmem:[%s2001_s4] sm:$0xff] (!%p216_p9)  ;;  %vm421_vm2 = vcmp.lt.s32.totalorder (!%p216_p9), %v1558_v40, 17  ;;  %vm442_vm3 = vcmp.lt.s32.totalorder (!%p216_p9), %v1558_v40, 16  ;;  %vm466_vm4 = vcmp.lt.s32.totalorder (!%p216_p9), %v1558_v40, 15  ;;  %vm490_vm5 = vcmp.lt.s32.totalorder (!%p216_p9), %v1558_v40, 1 }
  0x13   : > { %v424_v42 = vld [vmem:[%s2002_s5] sm:$0x3] (!%p216_p9)  ;;  %v1223_v43 = vld [vmem:[%s2002_s5 + $0x2] sm:$0x3] (!%p216_p9)  ;;  %v1224_v47 = vld [vmem:[%s2002_s5 + $0x4] sm:$0x3] (!%p216_p9) }
  0x14   : > { %v1578_v48 = vrot.slane (!%p216_p9), %v424_v42, %v1566_v44  ;;  %v1581_v49 = vrot.slane (!%p216_p9), %v424_v42, %v1568_v45  ;;  %v1584_v50 = vrot.slane (!%p216_p9), %v1223_v43, %v1566_v44  ;;  %v1587_v51 = vrot.slane (!%p216_p9), %v1223_v43, %v1568_v45  ;;  %v1225_v61 = vld [vmem:[%s2002_s5 + $0x6] sm:$0x3] (!%p216_p9)  ;;  %s1394_s15 = smov (!%p216_p9), [#allocation2]  }
  0x15   : > { %s246_s9 = scalar_select %p245_p10, %s1451_s25, 1  ;;  %v1599_v57 = vrot.slane %v1224_v47, %v1566_v44  ;;  %v1602_v58 = vrot.slane %v1224_v47, %v1568_v45  ;;  %vm531_vm6 = vcmp.lt.s32.totalorder %v1558_v40, 127  ;;  %vm555_vm7 = vcmp.lt.s32.totalorder %v1558_v40, 113  ;;  %v1230_v47 = vld [vmem:[%s2002_s5 + $0x10] sm:$0x3] }
  0x16   : > { %vm579_vm8 = vcmp.lt.s32.totalorder %v1558_v40, 112  ;;  %vm603_vm9 = vcmp.lt.s32.totalorder %v1558_v40, 111  ;;  %s1324_s16 = sshll.u32 %s1394_s15, 4  ;;  %s1325_s16 = int_to_ptr.vmem [resolvable:$false] %s1324_s16 }
  0x17   : > { %s1264_s10 = sshll.u32 %s246_s9, 3  ;;  %s1326_s9 = scalar_lea.vmem %s1325_s16, 512 }
  0x18   : > { %s249_s13 = scalar_lea.vmem %s1997_s0, %s1264_s10 }
  0x19   : > { %v250_v1 = vld [vmem:[%s249_s13] sm:$0xff] }
  0x1a   : > { %v262_v2 = vcombine.high %v250_v1, %v250_v1 }
  0x1c   : > { %1212 = vmatprep.subr.msk.mxu0 %vm291_vm0, %v262_v2  ;;  %1266 = vmatprep.subr.msk.mxu1 %vm291_vm0, %v262_v2 }
  0x1d   : > { %1213 = vmatpush1.msk.msra.mxu0 %vm291_vm0, %v250_v1  ;;  %1267 = vmatpush1.msk.msra.mxu1 %vm291_vm0, %v250_v1 }
  0x1e   : > { %1214 = vmatmul.mubr.msk.f32.vlgmr.msra.gmra.mrb[0].mxu0 %vm263_vm1, %v251_v3  ;;  %1219 = vmatmul.mubr.msk.f32.vlgmr.msra.gmra.mrb[0].mxu1 %vm263_vm1, %v256_v4 }
  0x1f   : > { %366 = vmatprep.mubr.f32.mxu0 %v1384_v0  ;;  %396 = vmatprep.mubr.f32.mxu1 %v1384_v0 }
  0x22   : > { %1215 = vmatmul.mubr.msk.f32.gmra.mrb[2].mxu0 %vm263_vm1, %v252_v5  ;;  %1220 = vmatmul.mubr.msk.f32.gmra.mrb[2].mxu1 %vm263_vm1, %v257_v6  ;;  %v1620_v6 = vrot.slane %v1226_v59, %v1566_v44 }
  0x23   : > { %372 = vmatprep.mubr.f32.mxu0 %v1384_v0  ;;  %402 = vmatprep.mubr.f32.mxu1 %v1384_v0 }
  0x26   : > { %1216 = vmatmul.mubr.msk.f32.gmra.mrb[4].mxu0 %vm263_vm1, %v253_v7  ;;  %1221 = vmatmul.mubr.msk.f32.gmra.mrb[4].mxu1 %vm263_vm1, %v258_v8  ;;  %v1623_v7 = vrot.slane %v1226_v59, %v1568_v45 }
  0x27   : > { %378 = vmatprep.mubr.f32.mxu0 %v1384_v0  ;;  %408 = vmatprep.mubr.f32.mxu1 %v1384_v0 }
  0x2a   : > { %1217 = vmatmul.mubr.msk.f32.gmra.mrb[6].mxu0 %vm263_vm1, %v254_v9  ;;  %1222 = vmatmul.mubr.msk.f32.gmra.mrb[6].mxu1 %vm263_vm1, %v259_v10  ;;  %v1628_v10 = vrot.slane %v1225_v61, %v1566_v44 }
  0x2b   : > { %384 = vmatprep.mubr.f32.mxu0 %v1384_v0  ;;  %732 = vmatprep.mubr.f32.mxu1 %v1384_v0 }
  0x2e   : > { %1218 = vmatmul.mubr.msk.f32.gmra.mrb[8].mxu0 %vm263_vm1, %v255_v11  ;;  %v1631_v11 = vrot.slane %v1225_v61, %v1568_v45  ;;  %v1697_v61 = vrot.slane %v1230_v47, %v1568_v45 }
  0x2f   : > { %981 = vmatprep.mubr.f32.mxu0 %v1384_v0 }
  0xf1   : > { %v362_v13 = vpop.f32.mrb[0].mxu0  ;;  %v392_v14 = vpop.f32.mrb[0].mxu1 }
  0xf2   : > { %v394_v15 = vpop.f32.mrb[1].mxu1  ;;  %415 = vrot.lane.b32.xlu0 %v362_v13, %s1386_s17  ;;  %v364_v16 = vpop.f32.mrb[1].mxu0  ;;  %v1227_v13 = vld [vmem:[%s2002_s5 + $0xa] sm:$0x3] }
  0xf3   : > { %529 = vrot.lane.b32.xlu1 %v394_v15, %s1387_s18 }
  0xf5   : > { %v368_v17 = vpop.f32.mrb[2].mxu0  ;;  %v398_v18 = vpop.f32.mrb[2].mxu1 }
  0xf6   : > { %527 = vrot.lane.b32.xlu0 %v392_v14, %s1387_s18  ;;  %v370_v19 = vpop.f32.mrb[3].mxu0  ;;  %v400_v20 = vpop.f32.mrb[3].mxu1 }
  0xf7   : > { %438 = vrot.lane.b32.xlu1 %v368_v17, %s1388_s19 }
  0xf9   : > { %v374_v21 = vpop.f32.mrb[4].mxu0  ;;  %v404_v22 = vpop.f32.mrb[4].mxu1 }
  0xfa   : > { %417 = vrot.lane.b32.xlu0 %v364_v16, %s1386_s17  ;;  %v376_v23 = vpop.f32.mrb[5].mxu0  ;;  %v406_v24 = vpop.f32.mrb[5].mxu1 }
  0xfb   : > { %440 = vrot.lane.b32.xlu1 %v370_v19, %s1388_s19 }
  0xfd   : > { %v380_v25 = vpop.f32.mrb[6].mxu0  ;;  %v410_v26 = vpop.f32.mrb[6].mxu1 }
  0xfe   : > { %551 = vrot.lane.b32.xlu0 %v398_v18, %s1389_s20  ;;  %v382_v27 = vpop.f32.mrb[7].mxu0  ;;  %v412_v28 = vpop.f32.mrb[7].mxu1 }
  0xff   : > { %553 = vrot.lane.b32.xlu1 %v400_v20, %s1389_s20 }
 0x101   : > { %v1538_v29 = vpop.f32.mrb[8].mxu0 }
 0x102   : > { %462 = vrot.lane.b32.xlu0 %v374_v21, %s1390_s26  ;;  %v1541_v30 = vpop.f32.mrb[9].mxu0  ;;  %v523_v19 = vmul.f32 %v1620_v6, %v1538_v29  ;;  %v1228_v29 = vld [vmem:[%s2002_s5 + $0xc] sm:$0x3] }
 0x103   : > { %464 = vrot.lane.b32.xlu1 %v376_v23, %s1390_s26  ;;  %v524_v20 = vmul.f32 %v1623_v7, %v1541_v30 }
 0x106   : > { %486 = vrot.lane.b32.xlu0 %v380_v25, %s1391_s28  ;;  %v1648_v25 = vrot.slane %v1227_v13, %v1566_v44 }
 0x107   : > { %488 = vrot.lane.b32.xlu1 %v382_v27, %s1391_s28 }
 0x10a   : > { %575 = vrot.lane.b32.xlu0 %v404_v22, %s1392_s29 }
 0x10b   : > { %577 = vrot.lane.b32.xlu1 %v406_v24, %s1392_s29 }
 0x10e   : > { %625 = vperm.xlu0 %1317, %v260_v31  }
 0x10f   : > { %599 = vrot.lane.b32.xlu1 %v410_v26, %s1393_s11  ;;  %v1651_v26 = vrot.slane %v1227_v13, %v1568_v45 }
 0x112   : > { %871 = vperm.xlu0 %1317, %v639_v32  }
 0x113   : > { %601 = vrot.lane.b32.xlu1 %v412_v28, %s1393_s11 }
 0x164   : > { %v416_v33 = vpop.permute.xlu0 %415 }
 0x165   : > { %v1556_v34 = vpop.permute.xlu1 %529 }
 0x168   : > { %v528_v36 = vpop.permute.xlu0 %527 }
 0x169   : > { %v439_v37 = vpop.permute.xlu1 %438  ;;  %v532_v27 = vsel %vm531_vm6, %v528_v36, %v1556_v34  ;;  %v533_v28 = vsel %vm531_vm6, %v1556_v34, %v528_v36  ;;  %v1669_v34 = vrot.slane %v1228_v29, %v1568_v45  ;;  %v1229_v36 = vld [vmem:[%s2002_s5 + $0xe] sm:$0x3] }
 0x16a   : > { %v548_v38 = vmul.f32 %v1651_v26, %v533_v28  ;;  %v1688_v59 = vrot.slane %v1229_v36, %v1568_v45  ;;  %v637_v28 = vld [vmem:[%s2000_s3 + $0x38] sm:$0xff] }
 0x16c   : > { %v418_v39 = vpop.permute.xlu0 %417 }
 0x16d   : > { %v441_v41 = vpop.permute.xlu1 %440  ;;  %v422_v53 = vsel %vm421_vm2, %v416_v33, %v418_v39  ;;  %v423_v54 = vsel %vm421_vm2, %v418_v39, %v416_v33  ;;  %v1666_v39 = vrot.slane %v1228_v29, %v1566_v44  ;;  %v638_v29 = vld [vmem:[%s2000_s3 + $0x40] sm:$0xff] }
 0x16e   : > { %v443_v55 = vsel %vm442_vm3, %v439_v37, %v441_v41  ;;  %v444_v56 = vsel %vm442_vm3, %v441_v41, %v439_v37  ;;  %v436_v62 = vmul.f32 %v1578_v48, %v423_v54  ;;  %v437_v63 = vmul.f32 %v1581_v49, %v422_v53 }
 0x16f   : > { %v458_v1 = vmul.f32 %v1584_v50, %v444_v56  ;;  %v459_v2 = vmul.f32 %v1587_v51, %v443_v55  ;;  %v547_v37 = vmul.f32 %v1648_v25, %v532_v27  ;;  %v1685_v56 = vrot.slane %v1229_v36, %v1566_v44  ;;  %v636_v27 = vld [vmem:[%s2000_s3 + $0x30] sm:$0xff] }
 0x170   : > { %v1572_v46 = vpop.permute.xlu0 %551 }
 0x171   : > { %v554_v52 = vpop.permute.xlu1 %553  ;;  %v460_v14 = vadd.f32 %v458_v1, %v436_v62  ;;  %v461_v15 = vadd.f32 %v459_v2, %v437_v63 }
 0x172   : > { %v556_v41 = vsel %vm555_vm7, %v1572_v46, %v554_v52  ;;  %v557_v42 = vsel %vm555_vm7, %v554_v52, %v1572_v46 }
 0x173   : > { %v571_v46 = vmul.f32 %v1666_v39, %v556_v41  ;;  %v572_v52 = vmul.f32 %v1669_v34, %v557_v42 }
 0x174   : > { %v463_v60 = vpop.permute.xlu0 %462 }
 0x175   : > { %v465_v3 = vpop.permute.xlu1 %464 }
 0x176   : > { %v467_v4 = vsel %vm466_vm4, %v463_v60, %v465_v3  ;;  %v468_v5 = vsel %vm466_vm4, %v465_v3, %v463_v60  ;;  %v1694_v60 = vrot.slane %v1230_v47, %v1566_v44 }
 0x177   : > { %v482_v8 = vmul.f32 %v1599_v57, %v468_v5  ;;  %v483_v9 = vmul.f32 %v1602_v58, %v467_v4 }
 0x178   : > { %v487_v12 = vpop.permute.xlu0 %486 }
 0x179   : > { %v489_v16 = vpop.permute.xlu1 %488  ;;  %v484_v21 = vadd.f32 %v482_v8, %v460_v14  ;;  %v485_v22 = vadd.f32 %v483_v9, %v461_v15 }
 0x17a   : > { %v491_v17 = vsel %vm490_vm5, %v487_v12, %v489_v16  ;;  %v492_v18 = vsel %vm490_vm5, %v489_v16, %v487_v12 }
 0x17b   : > { %v506_v23 = vmul.f32 %v1628_v10, %v492_v18  ;;  %v507_v24 = vmul.f32 %v1631_v11, %v491_v17 }
 0x17c   : > { %v576_v54 = vpop.permute.xlu0 %575 }
 0x17d   : > { %v508_v30 = vadd.f32 %v506_v23, %v484_v21  ;;  %v509_v31 = vadd.f32 %v507_v24, %v485_v22  ;;  %v578_v32 = vpop.permute.xlu1 %577  ;;  %v632_v21 = vld [vmem:[%s2000_s3 + $0x10] sm:$0xff]  ;;  %v633_v22 = vld [vmem:[%s2000_s3 + $0x18] sm:$0xff]  ;;  %v634_v23 = vld [vmem:[%s2000_s3 + $0x20] sm:$0xff] }
 0x17e   : > { %v580_v62 = vsel %vm579_vm8, %v576_v54, %v578_v32  ;;  %v581_v63 = vsel %vm579_vm8, %v578_v32, %v576_v54  ;;  %v635_v24 = vld [vmem:[%s2000_s3 + $0x28] sm:$0xff] }
 0x17f   : > { %v525_v33 = vadd.f32 %v523_v19, %v508_v30  ;;  %v526_v35 = vadd.f32 %v524_v20, %v509_v31  ;;  %v595_v44 = vmul.f32 %v1685_v56, %v580_v62  ;;  %v596_v45 = vmul.f32 %v1688_v59, %v581_v63  ;;  %v630_v19 = vld [vmem:[%s2000_s3] sm:$0xff]  ;;  %v631_v20 = vld [vmem:[%s2000_s3 + $0x8] sm:$0xff] }
 0x180   : > { %v1249_v63 = vld [vmem:[%s2001_s4 + $0x8] sm:$0xff] }
 0x181   : > { %v600_v43 = vpop.permute.xlu1 %599  ;;  %v549_v53 = vadd.f32 %v547_v37, %v525_v33  ;;  %v550_v55 = vadd.f32 %v548_v38, %v526_v35 }
 0x183   : > { %v573_v2 = vadd.f32 %v571_v46, %v549_v53  ;;  %v574_v3 = vadd.f32 %v572_v52, %v550_v55 }
 0x185   : > { %v602_v1 = vpop.permute.xlu1 %601  ;;  %v597_v12 = vadd.f32 %v595_v44, %v573_v2  ;;  %v598_v13 = vadd.f32 %v596_v45, %v574_v3 }
 0x186   : > { %v604_v4 = vsel %vm603_vm9, %v600_v43, %v602_v1  ;;  %v605_v5 = vsel %vm603_vm9, %v602_v1, %v600_v43 }
 0x187   : > { %v619_v8 = vmul.f32 %v1694_v60, %v604_v4  ;;  %v620_v9 = vmul.f32 %v1697_v61, %v605_v5 }
 0x189   : > { %v621_v14 = vadd.f32 %v619_v8, %v597_v12  ;;  %v622_v15 = vadd.f32 %v620_v9, %v598_v13 }
 0x18d   : > { %v626_v16 = vpop.permute.xlu0 %625 }
 0x18e   : > { %v1711_v17 = vadd.f32 %v626_v16, %v621_v14  ;;  %v1713_v18 = vadd.f32 %v626_v16, %v622_v15 }
 0x190   : > { %668 = vmatprep.subr.mxu1 %v1713_v18 }
 0x191   : > { %669 = vmatpush1.msra.mxu1 %v1711_v17  ;;  %v1780_v1 = vpop.permute.xlu0 %871 }
 0x192   : > { %1231 = vmatmul.mubr.msk.f32.vlgmr.msra.gmra.mrb[8].mxu1 %vm640_vm10, %v630_v19 }
 0x193   : > { %738 = vmatprep.mubr.f32.mxu1 %v1384_v0 }
 0x196   : > { %1232 = vmatmul.mubr.msk.f32.gmra.mrb[10].mxu1 %vm640_vm10, %v631_v20 }
 0x197   : > { %744 = vmatprep.mubr.f32.mxu1 %v1384_v0 }
 0x19a   : > { %1233 = vmatmul.mubr.msk.f32.gmra.mrb[12].mxu1 %vm640_vm10, %v632_v21 }
 0x19b   : > { %750 = vmatprep.mubr.f32.mxu1 %v1384_v0 }
 0x19e   : > { %1234 = vmatmul.mubr.msk.f32.gmra.mrb[14].mxu1 %vm640_vm10, %v633_v22 }
 0x19f   : > { %756 = vmatprep.mubr.f32.mxu1 %v1384_v0 }
 0x1a2   : > { %1235 = vmatmul.mubr.msk.f32.gmra.mrb[16].mxu1 %vm640_vm10, %v634_v23 }
 0x1a3   : > { %762 = vmatprep.mubr.f32.mxu1 %v1384_v0 }
 0x1a6   : > { %1236 = vmatmul.mubr.msk.f32.gmra.mrb[18].mxu1 %vm640_vm10, %v635_v24 }
 0x1a7   : > { %768 = vmatprep.mubr.f32.mxu1 %v1384_v0 }
 0x1aa   : > { %1237 = vmatmul.mubr.msk.f32.gmra.mrb[20].mxu1 %vm640_vm10, %v636_v27 }
 0x1ab   : > { %774 = vmatprep.mubr.f32.mxu1 %v1384_v0 }
 0x1ae   : > { %1238 = vmatmul.mubr.msk.f32.gmra.mrb[22].mxu1 %vm640_vm10, %v637_v28 }
 0x1af   : > { %780 = vmatprep.mubr.f32.mxu1 %v1384_v0 }
 0x1b2   : > { %1239 = vmatmul.mubr.msk.f32.gmra.mrb[24].mxu1 %vm640_vm10, %v638_v29 }
 0x265   : > { %v734_v30 = vpop.f32.mrb[8].mxu1 }
 0x266   : > { %787 = vrot.lane.b32.xlu0 %v734_v30, %s1386_s17  ;;  %v736_v31 = vpop.f32.mrb[9].mxu1 }
 0x267   : > { %789 = vrot.lane.b32.xlu1 %v736_v31, %s1386_s17 }
 0x269   : > { %v740_v32 = vpop.f32.mrb[10].mxu1 }
 0x26a   : > { %795 = vrot.lane.b32.xlu0 %v740_v32, %s1388_s19  ;;  %v742_v33 = vpop.f32.mrb[11].mxu1 }
 0x26b   : > { %797 = vrot.lane.b32.xlu1 %v742_v33, %s1388_s19 }
 0x26d   : > { %v746_v35 = vpop.f32.mrb[12].mxu1 }
 0x26e   : > { %805 = vrot.lane.b32.xlu0 %v746_v35, %s1390_s26  ;;  %v748_v37 = vpop.f32.mrb[13].mxu1 }
 0x26f   : > { %807 = vrot.lane.b32.xlu1 %v748_v37, %s1390_s26 }
 0x271   : > { %v752_v38 = vpop.f32.mrb[14].mxu1 }
 0x272   : > { %815 = vrot.lane.b32.xlu0 %v752_v38, %s1391_s28  ;;  %v754_v36 = vpop.f32.mrb[15].mxu1 }
 0x273   : > { %817 = vrot.lane.b32.xlu1 %v754_v36, %s1391_s28 }
 0x275   : > { %v758_v41 = vpop.f32.mrb[16].mxu1 }
 0x276   : > { %v760_v42 = vpop.f32.mrb[17].mxu1 }
 0x279   : > { %v764_v43 = vpop.f32.mrb[18].mxu1 }
 0x27a   : > { %829 = vrot.lane.b32.xlu0 %v764_v43, %s1387_s18  ;;  %v766_v47 = vpop.f32.mrb[19].mxu1 }
 0x27b   : > { %831 = vrot.lane.b32.xlu1 %v766_v47, %s1387_s18 }
 0x27d   : > { %v770_v53 = vpop.f32.mrb[20].mxu1 }
 0x27e   : > { %839 = vrot.lane.b32.xlu0 %v770_v53, %s1389_s20  ;;  %v772_v54 = vpop.f32.mrb[21].mxu1 }
 0x27f   : > { %841 = vrot.lane.b32.xlu1 %v772_v54, %s1389_s20 }
 0x281   : > { %v776_v55 = vpop.f32.mrb[22].mxu1 }
 0x282   : > { %849 = vrot.lane.b32.xlu0 %v776_v55, %s1392_s29  ;;  %v778_v46 = vpop.f32.mrb[23].mxu1 }
 0x283   : > { %851 = vrot.lane.b32.xlu1 %v778_v46, %s1392_s29 }
 0x285   : > { %v782_v52 = vpop.f32.mrb[24].mxu1 }
 0x286   : > { %v784_v62 = vpop.f32.mrb[25].mxu1 }
 0x287   : > { %859 = vrot.lane.b32.xlu1 %v782_v52, %s1393_s11  ;;  %861 = vrot.lane.b32.xlu0 %v784_v62, %s1393_s11 }
 0x28b   : > { %1120 = vperm.xlu1 %1318, %v1249_v63   ;;  %v825_v63 = vmul.f32 %v758_v41, %v1620_v6 }
 0x2d8   : > { %v788_v2 = vpop.permute.xlu0 %787 }
 0x2d9   : > { %v790_v3 = vpop.permute.xlu1 %789 }
 0x2da   : > { %v791_v14 = vsel %vm421_vm2, %v788_v2, %v790_v3  ;;  %v792_v15 = vsel %vm421_vm2, %v790_v3, %v788_v2  ;;  %v826_v2 = vmul.f32 %v760_v42, %v1623_v7 }
 0x2db   : > { %v793_v24 = vmul.f32 %v792_v15, %v1578_v48  ;;  %v794_v27 = vmul.f32 %v791_v14, %v1581_v49 }
 0x2dc   : > { %v796_v4 = vpop.permute.xlu0 %795 }
 0x2dd   : > { %v798_v5 = vpop.permute.xlu1 %797 }
 0x2de   : > { %v799_v8 = vsel %vm442_vm3, %v796_v4, %v798_v5  ;;  %v800_v9 = vsel %vm442_vm3, %v798_v5, %v796_v4 }
 0x2df   : > { %v801_v20 = vmul.f32 %v800_v9, %v1584_v50  ;;  %v802_v21 = vmul.f32 %v799_v8, %v1587_v51 }
 0x2e0   : > { %v806_v44 = vpop.permute.xlu0 %805 }
 0x2e1   : > { %v808_v45 = vpop.permute.xlu1 %807  ;;  %v803_v31 = vadd.f32 %v801_v20, %v793_v24  ;;  %v804_v32 = vadd.f32 %v802_v21, %v794_v27 }
 0x2e2   : > { %v809_v16 = vsel %vm466_vm4, %v806_v44, %v808_v45  ;;  %v810_v19 = vsel %vm466_vm4, %v808_v45, %v806_v44 }
 0x2e3   : > { %v811_v28 = vmul.f32 %v810_v19, %v1599_v57  ;;  %v812_v29 = vmul.f32 %v809_v16, %v1602_v58 }
 0x2e4   : > { %v816_v12 = vpop.permute.xlu0 %815 }
 0x2e5   : > { %v818_v13 = vpop.permute.xlu1 %817  ;;  %v813_v38 = vadd.f32 %v811_v28, %v803_v31  ;;  %v814_v36 = vadd.f32 %v812_v29, %v804_v32 }
 0x2e6   : > { %v819_v22 = vsel %vm490_vm5, %v816_v12, %v818_v13  ;;  %v820_v23 = vsel %vm490_vm5, %v818_v13, %v816_v12 }
 0x2e7   : > { %v821_v33 = vmul.f32 %v820_v23, %v1628_v10  ;;  %v822_v35 = vmul.f32 %v819_v22, %v1631_v11 }
 0x2e9   : > { %v823_v54 = vadd.f32 %v821_v33, %v813_v38  ;;  %v824_v55 = vadd.f32 %v822_v35, %v814_v36  ;;  %v1240_v36 = vld [vmem:[%s2000_s3 + $0x48] sm:$0xff] }
 0x2eb   : > { %v827_v44 = vadd.f32 %v825_v63, %v823_v54  ;;  %v828_v45 = vadd.f32 %v826_v2, %v824_v55  ;;  %v1245_v54 = vld [vmem:[%s2000_s3 + $0x70] sm:$0xff]  ;;  %v1246_v55 = vld [vmem:[%s2000_s3 + $0x78] sm:$0xff] }
 0x2ec   : > { %v830_v30 = vpop.permute.xlu0 %829 }
 0x2ed   : > { %v832_v37 = vpop.permute.xlu1 %831 }
 0x2ee   : > { %v833_v43 = vsel %vm531_vm6, %v830_v30, %v832_v37  ;;  %v834_v47 = vsel %vm531_vm6, %v832_v37, %v830_v30 }
 0x2ef   : > { %v835_v3 = vmul.f32 %v833_v43, %v1648_v25  ;;  %v836_v4 = vmul.f32 %v834_v47, %v1651_v26  ;;  %v1241_v43 = vld [vmem:[%s2000_s3 + $0x50] sm:$0xff]  ;;  %v1243_v47 = vld [vmem:[%s2000_s3 + $0x60] sm:$0xff] }
 0x2f0   : > { %v840_v53 = vpop.permute.xlu0 %839 }
 0x2f1   : > { %v842_v46 = vpop.permute.xlu1 %841  ;;  %v837_v14 = vadd.f32 %v835_v3, %v827_v44  ;;  %v838_v42 = vadd.f32 %v836_v4, %v828_v45 }
 0x2f2   : > { %v843_v52 = vsel %vm555_vm7, %v840_v53, %v842_v46  ;;  %v844_v62 = vsel %vm555_vm7, %v842_v46, %v840_v53  ;;  %v1244_v53 = vld [vmem:[%s2000_s3 + $0x68] sm:$0xff]  ;;  %v1247_v46 = vld [vmem:[%s2000_s3 + $0x80] sm:$0xff] }
 0x2f3   : > { %v845_v8 = vmul.f32 %v843_v52, %v1666_v39  ;;  %v846_v9 = vmul.f32 %v844_v62, %v1669_v34  ;;  %v1248_v52 = vld [vmem:[%s2000_s3 + $0x88] sm:$0xff] }
 0x2f4   : > { %v850_v5 = vpop.permute.xlu0 %849 }
 0x2f5   : > { %v852_v12 = vpop.permute.xlu1 %851  ;;  %v847_v19 = vadd.f32 %v845_v8, %v837_v14  ;;  %v848_v20 = vadd.f32 %v846_v9, %v838_v42 }
 0x2f6   : > { %v853_v13 = vsel %vm579_vm8, %v850_v5, %v852_v12  ;;  %v854_v41 = vsel %vm579_vm8, %v852_v12, %v850_v5 }
 0x2f7   : > { %v855_v15 = vmul.f32 %v853_v13, %v1685_v56  ;;  %v856_v16 = vmul.f32 %v854_v41, %v1688_v59 }
 0x2f9   : > { %v860_v21 = vpop.permute.xlu1 %859  ;;  %v862_v22 = vpop.permute.xlu0 %861  ;;  %v857_v27 = vadd.f32 %v855_v15, %v847_v19  ;;  %v858_v28 = vadd.f32 %v856_v16, %v848_v20 }
 0x2fa   : > { %v863_v23 = vsel %vm603_vm9, %v860_v21, %v862_v22  ;;  %v864_v24 = vsel %vm603_vm9, %v862_v22, %v860_v21 }
 0x2fb   : > { %v865_v29 = vmul.f32 %v863_v23, %v1694_v60  ;;  %v866_v30 = vmul.f32 %v864_v24, %v1697_v61 }
 0x2fd   : > { %v867_v31 = vadd.f32 %v865_v29, %v857_v27  ;;  %v868_v32 = vadd.f32 %v866_v30, %v858_v28 }
 0x2ff   : > { %v874_v33 = vadd.f32 %v1780_v1, %v867_v31  ;;  %v875_v35 = vadd.f32 %v1780_v1, %v868_v32  ;;  %v1242_v1 = vld [vmem:[%s2000_s3 + $0x58] sm:$0xff] }
 0x301   : > { %v876_v37 = vmax.f32 %v874_v33, 0.0  ;;  %v877_v38 = vmax.f32 %v875_v35, 0.0 }
 0x303   : > { %917 = vmatprep.subr.mxu0 %v877_v38 }
 0x304   : > { %918 = vmatpush1.msra.mxu0 %v876_v37 }
 0x305   : > { %1250 = vmatmul.mubr.msk.f32.vlgmr.msra.gmra.mrb[10].mxu0 %vm640_vm10, %v1240_v36 }
 0x306   : > { %987 = vmatprep.mubr.f32.mxu0 %v1384_v0 }
 0x309   : > { %1251 = vmatmul.mubr.msk.f32.gmra.mrb[12].mxu0 %vm640_vm10, %v1241_v43 }
 0x30a   : > { %993 = vmatprep.mubr.f32.mxu0 %v1384_v0  ;;  %v1894_v19 = vpop.permute.xlu1 %1120 }
 0x30d   : > { %1252 = vmatmul.mubr.msk.f32.gmra.mrb[14].mxu0 %vm640_vm10, %v1242_v1 }
 0x30e   : > { %999 = vmatprep.mubr.f32.mxu0 %v1384_v0 }
 0x311   : > { %1253 = vmatmul.mubr.msk.f32.gmra.mrb[16].mxu0 %vm640_vm10, %v1243_v47 }
 0x312   : > { %1005 = vmatprep.mubr.f32.mxu0 %v1384_v0 }
 0x315   : > { %1254 = vmatmul.mubr.msk.f32.gmra.mrb[18].mxu0 %vm640_vm10, %v1244_v53 }
 0x316   : > { %1011 = vmatprep.mubr.f32.mxu0 %v1384_v0 }
 0x319   : > { %1255 = vmatmul.mubr.msk.f32.gmra.mrb[20].mxu0 %vm640_vm10, %v1245_v54 }
 0x31a   : > { %1017 = vmatprep.mubr.f32.mxu0 %v1384_v0 }
 0x31d   : > { %1256 = vmatmul.mubr.msk.f32.gmra.mrb[22].mxu0 %vm640_vm10, %v1246_v55 }
 0x31e   : > { %1023 = vmatprep.mubr.f32.mxu0 %v1384_v0 }
 0x321   : > { %1257 = vmatmul.mubr.msk.f32.gmra.mrb[24].mxu0 %vm640_vm10, %v1247_v46 }
 0x322   : > { %1029 = vmatprep.mubr.f32.mxu0 %v1384_v0 }
 0x325   : > { %1258 = vmatmul.mubr.msk.f32.gmra.mrb[26].mxu0 %vm640_vm10, %v1248_v52 }
 0x3d8   : > { %v983_v62 = vpop.f32.mrb[10].mxu0 }
 0x3d9   : > { %v985_v63 = vpop.f32.mrb[11].mxu0  ;;  %1036 = vrot.lane.b32.xlu1 %v983_v62, %s1386_s17 }
 0x3da   : > { %1038 = vrot.lane.b32.xlu0 %v985_v63, %s1386_s17  ;;  %s242_s17 = sand.u32 1, %s1374_s22  }
 0x3dc   : > { %v989_v2 = vpop.f32.mrb[12].mxu0 }
 0x3dd   : > { %v991_v3 = vpop.f32.mrb[13].mxu0  ;;  %1044 = vrot.lane.b32.xlu1 %v989_v2, %s1388_s19 }
 0x3de   : > { %1046 = vrot.lane.b32.xlu0 %v991_v3, %s1388_s19  ;;  %s1265_s19 = sshll.u32 %s1451_s25, 8  ;;  %s1132_s25 = scalar_lea.sflag [#allocation3], %s242_s17 }
 0x3e0   : > { %v995_v4 = vpop.f32.mrb[14].mxu0 }
 0x3e1   : > { %v997_v0 = vpop.f32.mrb[15].mxu0  ;;  %1054 = vrot.lane.b32.xlu1 %v995_v4, %s1390_s26 }
 0x3e2   : > { %1056 = vrot.lane.b32.xlu0 %v997_v0, %s1390_s26 }
 0x3e4   : > { %v1001_v5 = vpop.f32.mrb[16].mxu0 }
 0x3e5   : > { %v1003_v44 = vpop.f32.mrb[17].mxu0  ;;  %1064 = vrot.lane.b32.xlu1 %v1001_v5, %s1391_s28 }
 0x3e6   : > { %1066 = vrot.lane.b32.xlu0 %v1003_v44, %s1391_s28 }
 0x3e8   : > { %v1007_v45 = vpop.f32.mrb[18].mxu0 }
 0x3e9   : > { %v1009_v8 = vpop.f32.mrb[19].mxu0 }
 0x3ea   : > { %v1075_v44 = vmul.f32 %v1009_v8, %v1623_v7 }
 0x3ec   : > { %v1013_v9 = vpop.f32.mrb[20].mxu0 }
 0x3ed   : > { %v1015_v12 = vpop.f32.mrb[21].mxu0  ;;  %1078 = vrot.lane.b32.xlu1 %v1013_v9, %s1387_s18 }
 0x3ee   : > { %1080 = vrot.lane.b32.xlu0 %v1015_v12, %s1387_s18  ;;  %s1209_s18 = sshll.u32 %s242_s17, 4 }
 0x3f0   : > { %v1019_v13 = vpop.f32.mrb[22].mxu0 }
 0x3f1   : > { %v1021_v41 = vpop.f32.mrb[23].mxu0  ;;  %1088 = vrot.lane.b32.xlu1 %v1019_v13, %s1389_s20 }
 0x3f2   : > { %1090 = vrot.lane.b32.xlu0 %v1021_v41, %s1389_s20  ;;  %s244_s20 = scalar_lea.vmem [#allocation2], %s1209_s18 }
 0x3f3   : > { %s1146_s26 = sshll.u32 %s244_s20, 4  ;;  %s1957_s26 = int_to_ptr.vmem [resolvable:$true] %s1146_s26 }
 0x3f4   : > { %v1025_v14 = vpop.f32.mrb[24].mxu0  ;;  %s1320_s14 = scalar_lea.vmem %s1957_s26, 256  ;;  %p1327_p0 = scmp.lt.s32.totalorder %s1957_s26, %s1325_s16 }
 0x3f5   : > { %v1027_v42 = vpop.f32.mrb[25].mxu0  ;;  %1098 = vrot.lane.b32.xlu1 %v1025_v14, %s1392_s29  ;;  %p1321_p11 = scmp.ne.s32.totalorder %s1957_s26, %s1320_s14  ;;  %p1328_p1 = scmp.lt.s32.totalorder %s1326_s9, %s1320_s14 }
 0x3f6   : > { %1100 = vrot.lane.b32.xlu0 %v1027_v42, %s1392_s29 }
 0x3f7   : > { %p1322_p12 = pnand %p1321_p11, %p1468_p5  ;;  %p1329_p2 = por %p1328_p1, %p1327_p0 }
 0x3f8   : > { %v1031_v15 = vpop.f32.mrb[26].mxu0 }
 0x3f9   : > { %v1033_v16 = vpop.f32.mrb[27].mxu0  ;;  %p1323_p13 = pneg %p1322_p12 }
 0x3fa   : > { %1108 = vrot.lane.b32.xlu0 %v1031_v15, %s1393_s11  ;;  %1110 = vrot.lane.b32.xlu1 %v1033_v16, %s1393_s11  ;;  %s1955_s11 = scalar_lea.hbm %s2003_s6, %s1265_s19 }
 0x3fb   : > { %p1330_p3 = pnand %p1329_p2, %p1323_p13 }
 0x44b   : > { %v1037_v20 = vpop.permute.xlu1 %1036 }
 0x44c   : > { %v1039_v21 = vpop.permute.xlu0 %1038 }
 0x44d   : > { %v1040_v32 = vsel %vm421_vm2, %v1037_v20, %v1039_v21  ;;  %v1041_v33 = vsel %vm421_vm2, %v1039_v21, %v1037_v20 }
 0x44e   : > { %v1042_v47 = vmul.f32 %v1041_v33, %v1578_v48  ;;  %v1043_v53 = vmul.f32 %v1040_v32, %v1581_v49 }
 0x44f   : > { %v1045_v22 = vpop.permute.xlu1 %1044 }
 0x450   : > { %v1047_v23 = vpop.permute.xlu0 %1046 }
 0x451   : > { %v1048_v28 = vsel %vm442_vm3, %v1045_v22, %v1047_v23  ;;  %v1049_v29 = vsel %vm442_vm3, %v1047_v23, %v1045_v22 }
 0x452   : > { %v1050_v38 = vmul.f32 %v1049_v29, %v1584_v50  ;;  %v1051_v36 = vmul.f32 %v1048_v28, %v1587_v51 }
 0x453   : > { %v1055_v24 = vpop.permute.xlu1 %1054 }
 0x454   : > { %v1057_v27 = vpop.permute.xlu0 %1056  ;;  %v1052_v52 = vadd.f32 %v1050_v38, %v1042_v47  ;;  %v1053_v62 = vadd.f32 %v1051_v36, %v1043_v53 }
 0x455   : > { %v1058_v35 = vsel %vm466_vm4, %v1055_v24, %v1057_v27  ;;  %v1059_v37 = vsel %vm466_vm4, %v1057_v27, %v1055_v24 }
 0x456   : > { %v1060_v54 = vmul.f32 %v1059_v37, %v1599_v57  ;;  %v1061_v55 = vmul.f32 %v1058_v35, %v1602_v58 }
 0x457   : > { %v1065_v30 = vpop.permute.xlu1 %1064 }
 0x458   : > { %v1067_v31 = vpop.permute.xlu0 %1066  ;;  %v1062_v2 = vadd.f32 %v1060_v54, %v1052_v52  ;;  %v1063_v3 = vadd.f32 %v1061_v55, %v1053_v62 }
 0x459   : > { %v1068_v43 = vsel %vm490_vm5, %v1065_v30, %v1067_v31  ;;  %v1069_v1 = vsel %vm490_vm5, %v1067_v31, %v1065_v30 }
 0x45a   : > { %v1070_v50 = vmul.f32 %v1069_v1, %v1628_v10  ;;  %v1071_v51 = vmul.f32 %v1068_v43, %v1631_v11  ;;  %v1074_v11 = vmul.f32 %v1007_v45, %v1620_v6 }
 0x45c   : > { %v1072_v57 = vadd.f32 %v1070_v50, %v1062_v2  ;;  %v1073_v0 = vadd.f32 %v1071_v51, %v1063_v3 }
 0x45e   : > { %v1076_v41 = vadd.f32 %v1074_v11, %v1072_v57  ;;  %v1077_v14 = vadd.f32 %v1075_v44, %v1073_v0 }
 0x45f   : > { %v1079_v46 = vpop.permute.xlu1 %1078 }
 0x460   : > { %v1081_v63 = vpop.permute.xlu0 %1080 }
 0x461   : > { %v1082_v4 = vsel %vm531_vm6, %v1079_v46, %v1081_v63  ;;  %v1083_v48 = vsel %vm531_vm6, %v1081_v63, %v1079_v46 }
 0x462   : > { %v1084_v9 = vmul.f32 %v1082_v4, %v1648_v25  ;;  %v1085_v12 = vmul.f32 %v1083_v48, %v1651_v26 }
 0x463   : > { %v1089_v49 = vpop.permute.xlu1 %1088 }
 0x464   : > { %v1091_v58 = vpop.permute.xlu0 %1090  ;;  %v1086_v45 = vadd.f32 %v1084_v9, %v1076_v41  ;;  %v1087_v7 = vadd.f32 %v1085_v12, %v1077_v14 }
 0x465   : > { %v1092_v5 = vsel %vm555_vm7, %v1089_v49, %v1091_v58  ;;  %v1093_v10 = vsel %vm555_vm7, %v1091_v58, %v1089_v49 }
 0x466   : > { %v1094_v42 = vmul.f32 %v1092_v5, %v1666_v39  ;;  %v1095_v15 = vmul.f32 %v1093_v10, %v1669_v34 }
 0x467   : > { %v1099_v13 = vpop.permute.xlu1 %1098 }
 0x468   : > { %v1101_v16 = vpop.permute.xlu0 %1100  ;;  %v1096_v8 = vadd.f32 %v1094_v42, %v1086_v45  ;;  %v1097_v21 = vadd.f32 %v1095_v15, %v1087_v7 }
 0x469   : > { %v1102_v20 = vsel %vm579_vm8, %v1099_v13, %v1101_v16  ;;  %v1103_v6 = vsel %vm579_vm8, %v1101_v16, %v1099_v13 }
 0x46a   : > { %v1104_v25 = vmul.f32 %v1102_v20, %v1685_v56  ;;  %v1105_v26 = vmul.f32 %v1103_v6, %v1688_v59 }
 0x46c   : > { %v1109_v39 = vpop.permute.xlu0 %1108  ;;  %v1111_v22 = vpop.permute.xlu1 %1110  ;;  %v1106_v24 = vadd.f32 %v1104_v25, %v1096_v8  ;;  %v1107_v27 = vadd.f32 %v1105_v26, %v1097_v21 }
 0x46d   : > { %v1112_v34 = vsel %vm603_vm9, %v1109_v39, %v1111_v22  ;;  %v1113_v23 = vsel %vm603_vm9, %v1111_v22, %v1109_v39 }
 0x46e   : > { %v1114_v28 = vmul.f32 %v1112_v34, %v1694_v60  ;;  %v1115_v56 = vmul.f32 %v1113_v23, %v1697_v61 }
 0x470   : > { %v1116_v59 = vadd.f32 %v1114_v28, %v1106_v24  ;;  %v1117_v29 = vadd.f32 %v1115_v56, %v1107_v27 }
 0x472   : > { %v1123_v30 = vadd.f32 %v1894_v19, %v1116_v59  ;;  %v1124_v31 = vadd.f32 %v1894_v19, %v1117_v29 }
 0x474   : > { %v1125_v32 = vmax.f32 %v1123_v30, 0.0  ;;  %v1126_v40 = vmax.f32 %v1124_v31, 0.0 }
 0x476   : > { %v1127_v33 = vadd.f32 %v1125_v32, %v1711_v17  ;;  %v1128_v35 = vadd.f32 %v1126_v40, %v1713_v18 }
 0x478   : > { %1129 = vst [vmem:[%s244_s20] sm:$0xff] %v1127_v33  ;;  %1130 = vst [vmem:[%s244_s20 + $0x8] sm:$0xff] %v1128_v35 }
 0x479   : > { %1333 = shalt.err (!%p1330_p3)
}
 0x47a   : > { %s1334_s10 = scalar_lea.hbm %s1955_s11, 256  ;;  %s1338_s17 = scalar_lea.hbm %s2003_s6, 512 }
 0x47b   : > { %p1335_p4 = scmp.ne.s32.totalorder %s1955_s11, %s1334_s10  ;;  %p1339_p9 = scmp.lt.u32.totalorder %s1955_s11, %s2003_s6 }
 0x47c   : > { %p1340_p10 = scmp.lt.u32.totalorder %s1338_s17, %s1334_s10  ;;  %p1342_p12 = scmp.lt.u32.totalorder %s1334_s10, %s1955_s11 }
 0x47d   : > { %p1336_p7 = pnand %p1335_p4, %p1468_p5 }
 0x47e   : > { %p1341_p11 = por %p1340_p10, %p1339_p9 }
 0x47f   : > { %p1337_p8 = pneg %p1336_p7 }
 0x480   : > { %p1343_p13 = por %p1342_p12, %p1341_p11 }
 0x482   : > { %p1344_p0 = pnand %p1343_p13, %p1337_p8 }
 0x484   : > { %1347 = shalt.err (!%p1344_p0)
}
 0x485   : > { %1268 = dma.vmem_to_hbm [thread:$0]  (%p1468_p5), %s1957_s26, 256, %s1955_s11, %s1132_s25  }
 0x486 PF: > { %p1274_p1 = scmp.ge.s32.totalorder %s1382_s24, 2  ;;  %s1158_s20 = sand.u32 1, %s1370_s21  }
 0x487   : > { %s1159_s28 = scalar_lea.sflag [#allocation3], %s1158_s20 }
 0x488   : > { %p1271_p2 = pnand %p1274_p1, %p1472_p6 }
 0x48a   : > { %1365 = dma.done.wait (!%p1271_p2), %s1159_s28, 256  }
 0x48b   : > { %1367 = vsyncadd (!%p1271_p2), %s1159_s28, 4294967040  ;;  %p16_p3 = scmp.ge.s32.totalorder %s1455_s27, 4   ;;  %s2006_s21 = smov %s1374_s22 }
 0x48c   : > { %s2007_s22 = smov %s1378_s23  ;;  %s2008_s23 = smov %s1466_s30 }
 0x48d   : > { %s2009_s24 = smov %s1455_s27  ;;  %18 = sbr.rel (!%p16_p3) target bundleno = 3 (0x3), region = 89 }
 0x494   :  { %1164 = vsyncpa [#allocation3], 1 }
 0x495   :  { %1166 = vsyncpa [#allocation3 + $0x1], 1 }

</bundles_post_ra>
